<compile_context>
chip_gen: v6e
topology: v6e:2x2x1
jax: 0.10.0
libtpu: 0.0.40
codegen_flags: <defaults>
</compile_context>

<pallas_src>
import jax
import jax.numpy as jnp
from jax.experimental import pallas as pl
from jax.experimental.pallas import tpu as pltpu


def _round_up(x, m):
    return -(-x // m) * m


# ----------------------------------------------------------------------------
# Fused kernel: one MXU matmul per row tile.  Conv-transpose + residual + proj1
# (token rows) and proj2 (cls rows) plus both biases are all folded into the
# single weight `w_ref`, so there is nothing else to do in the body.
# ----------------------------------------------------------------------------
def _fused_neck_kernel(x_ref, w_ref, y_ref):
    y_ref[...] = jnp.dot(
        x_ref[...], w_ref[...], preferred_element_type=jnp.float32
    ).astype(y_ref.dtype)


# ----------------------------------------------------------------------------
# Parameter init (mirrors the nn.Module __init__ shapes, BN=False branch).
#   ConvTranspose2d weight: (n, k, s, s), bias: (k,)   [n=backbone_embed_dim[1], k=[0]]
#   proj1: Linear(k, output_dim)      -> (output_dim, k), (output_dim,)
#   proj2: Linear(hidden, output_dim) -> (output_dim, hidden), (output_dim,)
# ----------------------------------------------------------------------------
def init_params(key, backbone_embed_dim, hidden_dim, output_dim, stride):
    k_dim, n_dim = backbone_embed_dim[0], backbone_embed_dim[1]
    keys = jax.random.split(key, 6)
    conv_w = 0.05 * jax.random.normal(keys[0], (n_dim, k_dim, stride, stride), jnp.float32)
    conv_b = 0.01 * jax.random.normal(keys[1], (k_dim,), jnp.float32)
    w1 = 0.05 * jax.random.normal(keys[2], (output_dim, k_dim), jnp.float32)
    b1 = 0.01 * jax.random.normal(keys[3], (output_dim,), jnp.float32)
    w2 = 0.05 * jax.random.normal(keys[4], (output_dim, hidden_dim), jnp.float32)
    b2 = 0.01 * jax.random.normal(keys[5], (output_dim,), jnp.float32)
    return conv_w, conv_b, w1, b1, w2, b2


# ----------------------------------------------------------------------------
# Forward pass (semantics of NECK_MAXMIDF.forward, BN=False, one conv layer as
# the ModuleList(Sequential(ConvTranspose2d)) builds).
# xz_list[i]: (B, tokens_i, C_i); only xz_list[0] / xz_list[1] feed the FPN,
# xz_list[-1][:, 0:1, :] is the cls token.  Returns (1 + 4*num_x, B, out_dim).
# ----------------------------------------------------------------------------
def neck_maxmidf_forward(xz_list, params, *, num_x, stride, row_tile=128):
    conv_w, conv_b, w1, b1, w2, b2 = params
    s = stride
    ss = s * s
    nl = len(xz_list)
    f32 = jnp.float32
    bf16 = jnp.bfloat16

    # cls token (last list entry, first token)
    cls_tok = xz_list[-1][:, 0:1, :]
    hidden = cls_tok.shape[-1]
    assert hidden == w2.shape[1], (hidden, w2.shape)

    # FPN features (only i == 0 and i == 1 are used, as in the module)
    ntok0 = num_x * 4 ** (nl - 1 - 0)
    ntok1 = num_x * 4 ** (nl - 1 - 1)
    x0 = xz_list[0][:, 0:ntok0, :]            # fine level   (B, ntok0, k)
    x1 = xz_list[1][:, 0:ntok1, :]            # coarse level (B, ntok1, n)
    B, N1, n = x1.shape
    _, N0, k = x0.shape
    L = int(N1 ** 0.5)
    assert L * L == N1 and int(N0 ** 0.5) == L * s, (N1, N0, s)

    out_dim = w1.shape[0]
    # Per-phase output padding so the fused (phase, out) lane dim is 128-dense.
    if 128 % ss == 0:
        per = 128 // ss
        out_pad = _round_up(out_dim, per)
    else:
        out_pad = out_dim
    nout_raw = ss * out_pad
    nout = _round_up(nout_raw, 128)           # lane-dense output (unmasked vst)

    # ---------------- one-time weight folding (tiny, XLA-side) --------------
    # ConvTranspose2d weight (n, k, s, s) -> (n, ss*k), columns phase-major (a, c, cout)
    wc = jnp.transpose(conv_w, (0, 2, 3, 1)).reshape(n, ss * k).astype(f32)
    # proj1 as per-phase block-diagonal (ss*k, ss*out_pad)
    w1p = jnp.zeros((out_pad, k), f32).at[:out_dim].set(w1)
    eye = jnp.eye(ss, dtype=f32)
    w1big = (eye[:, None, :, None] * w1p.T[None, :, None, :]).reshape(ss * k, nout_raw)
    # conv folded through proj1; residual-through-proj1; proj2; two bias rows.
    wfold = wc @ w1big                                              # (n, nout_raw)
    b1p = jnp.zeros((out_pad,), f32).at[:out_dim].set(b1)
    bfused = jnp.tile(conv_b, ss)[None, :] @ w1big + jnp.tile(b1p, ss)[None, :]
    w2seg = jnp.zeros((hidden, nout_raw), f32).at[:, :out_dim].set(w2.T)
    b2row = jnp.zeros((1, nout_raw), f32).at[:, :out_dim].set(b2[None, :])
    wall = jnp.concatenate([wfold, w1big, w2seg, bfused, b2row], axis=0)

    kin = n + ss * k + hidden + 2            # +2 bias indicator columns
    kpad = _round_up(kin, 128)
    wall = jnp.pad(wall, ((0, kpad - kin), (0, nout - nout_raw))).astype(bf16)

    # ---------------- activation re-layout ----------------------------------
    # Fine tokens regrouped from fine-token order (I*Ls + J) into
    # (coarse token, phase) order so the residual fuses into the same matmul row.
    x0r = x0.reshape(B, L, s, L, s, k)
    x0r = jnp.transpose(x0r, (0, 1, 3, 2, 4, 5)).reshape(B * N1, ss * k)
    x1f = x1.reshape(B * N1, n)
    clsf = cls_tok.reshape(B, hidden)

    tok_rows = jnp.concatenate(
        [x1f.astype(f32), x0r.astype(f32),
         jnp.zeros((B * N1, hidden), f32),
         jnp.ones((B * N1, 1), f32),
         jnp.zeros((B * N1, 1), f32)], axis=-1)
    cls_rows = jnp.concatenate(
        [jnp.zeros((B, n + ss * k), f32), clsf.astype(f32),
         jnp.zeros((B, 1), f32),
         jnp.ones((B, 1), f32)], axis=-1)

    rows = B * N1 + B
    rows_pad = _round_up(max(rows, row_tile), row_tile)
    xall = jnp.concatenate([tok_rows, cls_rows], axis=0)
    xall = jnp.pad(xall, ((0, rows_pad - rows), (0, kpad - kin))).astype(bf16)

    grid_m = rows_pad // row_tile
    flops = 2 * rows_pad * kpad * nout
    bytes_accessed = xall.size * 2 + wall.size * 2 + rows_pad * nout * 4

    y = pl.pallas_call(
        _fused_neck_kernel,
        out_shape=jax.ShapeDtypeStruct((rows_pad, nout), jnp.float32),
        grid_spec=pltpu.PrefetchScalarGridSpec(
            num_scalar_prefetch=0,
            grid=(grid_m,),
            in_specs=[
                pl.BlockSpec((row_tile, kpad), lambda i: (i, 0)),   # activations
                pl.BlockSpec((kpad, nout), lambda i: (0, 0)),       # folded weight (resident)
            ],
            out_specs=pl.BlockSpec((row_tile, nout), lambda i: (i, 0)),
        ),
        compiler_params=pltpu.CompilerParams(
            dimension_semantics=("parallel",)),
        cost_estimate=pl.CostEstimate(
            flops=flops, transcendentals=0, bytes_accessed=bytes_accessed),
    )(xall, wall)

    # ---------------- unpack to (Seq, B, out_dim) ----------------------------
    # Token rows: (b, i, j) x phases (a, c) -> sequence index (i*s+a)*Ls + (j*s+c).
    y_tok = y[:B * N1, :nout_raw].reshape(B, L, L, s, s, out_pad)[..., :out_dim]
    ysp = jnp.transpose(y_tok, (1, 3, 2, 4, 0, 5)).reshape(N0, B, out_dim)
    cls_out = y[B * N1:rows, :out_dim][None, :, :]
    return jnp.concatenate((cls_out, ysp), axis=0)


# ----------------------------------------------------------------------------
# Pure-JAX reference mirroring the PyTorch forward literally (sanity check).
# ----------------------------------------------------------------------------
def _reference_forward(xz_list, params, *, num_x, stride):
    conv_w, conv_b, w1, b1, w2, b2 = params
    s = stride
    cls = jnp.transpose(xz_list[-1][:, 0:1, :], (1, 0, 2))            # (1, B, hidden)
    fpn = []
    for i in range(len(xz_list)):
        if i == 0 or i == 1:
            ntok = num_x * 4 ** (len(xz_list) - 1 - i)
            x = xz_list[i][:, 0:ntok, :]
            Br, N, C = x.shape
            Ln = int(N ** 0.5)
            fpn.append(jnp.transpose(x, (0, 2, 1)).reshape(Br, C, Ln, Ln))
    x = fpn[-1]
    # ConvTranspose2d with kernel == stride: each input pixel stamps an s x s patch.
    Br, Cin, H, W = x.shape
    Cout = conv_w.shape[1]
    y = jnp.einsum("nchw,ckab->nkhawb", x, conv_w)
    y = y.reshape(Br, Cout, H * s, W * s) + conv_b[None, :, None, None]
    x = y + fpn[0]                                                    # residual (i == 0)
    Br, C, Ln, _ = x.shape
    x = jnp.transpose(x.reshape(Br, C, Ln * Ln), (2, 0, 1))           # (Seq, B, C)
    x = jnp.einsum("sbc,oc->sbo", x, w1) + b1
    cls = jnp.einsum("sbc,oc->sbo", cls, w2) + b2
    return jnp.concatenate((cls, x), axis=0)


if __name__ == "__main__":
    # Small config consistent with the module's forward:
    #   len(xz_list) == 2 -> xz_list[0]: fine level with 4*num_x tokens and
    #   backbone_embed_dim[0] channels, xz_list[1]: coarse level with num_x
    #   tokens and backbone_embed_dim[1] channels (its first token is the cls).
    num_x = 64                      # coarse level is 8x8 tokens
    stride = 2
    backbone_embed_dim = (32, 64)   # (k = fine/conv-out channels, n = coarse/conv-in channels)
    hidden_dim = backbone_embed_dim[1]   # cls comes from the coarse stage
    output_dim = 16
    B = 2

    key = jax.random.PRNGKey(0)
    k0, k1, kp = jax.random.split(key, 3)
    xz0 = jax.random.normal(k0, (B, 4 * num_x, backbone_embed_dim[0]), jnp.float32)
    xz1 = jax.random.normal(k1, (B, num_x, backbone_embed_dim[1]), jnp.float32)
    params = init_params(kp, backbone_embed_dim, hidden_dim, output_dim, stride)

    fwd = jax.jit(lambda a, b, p: neck_maxmidf_forward([a, b], p,
                                                       num_x=num_x, stride=stride))
    out = fwd(xz0, xz1, params)
    out = jax.block_until_ready(out)

    expected_shape = (1 + 4 * num_x, B, output_dim)
    assert out.shape == expected_shape, (out.shape, expected_shape)

    ref = _reference_forward([xz0, xz1], params, num_x=num_x, stride=stride)
    ref = jax.block_until_ready(ref)
    err = float(jnp.max(jnp.abs(out - ref)))
    # bf16 matmul operands with f32 accumulation -> loosened tolerance vs f32 ref.
    assert jnp.allclose(out, ref, atol=2e-2, rtol=2e-2), err

    print("KERNEL_OK")
</pallas_src>

<mosaic_0001>
module attributes {stable_mosaic.version = 11 : i64} {
  func.func @_fused_neck_kernel(%arg0: i32, %arg1: memref<128x384xbf16, #tpu.memory_space<vmem>>, %arg2: memref<384x128xbf16, #tpu.memory_space<vmem>>, %arg3: memref<128x128xf32, #tpu.memory_space<vmem>>) attributes {dimension_semantics = [#tpu.dimension_semantics<parallel>], iteration_bounds = array<i64: 2>, scalar_prefetch = 0 : i64, scratch_operands = 0 : i64, tpu.core_type = #tpu.core_type<tc>, window_params = [{transform_indices = @transform_0, window_bounds = array<i64: 128, 384>}, {pipeline_mode = #tpu.pipeline_mode<synchronous>, transform_indices = @transform_1, window_bounds = array<i64: 384, 128>}, {transform_indices = @transform_2, window_bounds = array<i64: 128, 128>}]} {
    %c0 = arith.constant 0 : index
    %c0_0 = arith.constant 0 : index
    %0 = vector.load %arg1[%c0, %c0_0] : memref<128x384xbf16, #tpu.memory_space<vmem>>, vector<128x384xbf16>
    %c0_1 = arith.constant 0 : index
    %c0_2 = arith.constant 0 : index
    %1 = vector.load %arg2[%c0_1, %c0_2] : memref<384x128xbf16, #tpu.memory_space<vmem>>, vector<384x128xbf16>
    %cst = arith.constant dense<0.000000e+00> : vector<128x128xf32>
    %2 = tpu.matmul %0, %1, %cst {dimension_numbers = #tpu.dot_dimension_numbers<[1], [0], [0], [1], [0, 0, 1, 1], [], []>} : vector<128x384xbf16>, vector<384x128xbf16>, vector<128x128xf32> -> vector<128x128xf32>
    %c0_3 = arith.constant 0 : index
    %c0_4 = arith.constant 0 : index
    %3 = vector.load %arg3[%c0_3, %c0_4] : memref<128x128xf32, #tpu.memory_space<vmem>>, vector<128x128xf32>
    tpu.vector_store %arg3[%c0_3, %c0_4], %2 {strides = array<i32>} : memref<128x128xf32, #tpu.memory_space<vmem>>, vector<128x128xf32>,
    return
  }
  func.func @transform_0(%arg0: i32) -> (i32, i32) {
    %c0_i32 = arith.constant 0 : i32
    %c0_i32_0 = arith.constant 0 : i32
    return %arg0, %c0_i32 : i32, i32
  }
  func.func @transform_1(%arg0: i32) -> (i32, i32) {
    %c0_i32 = arith.constant 0 : i32
    %c0_i32_0 = arith.constant 0 : i32
    %c0_i32_1 = arith.constant 0 : i32
    return %c0_i32, %c0_i32_0 : i32, i32
  }
  func.func @transform_2(%arg0: i32) -> (i32, i32) {
    %c0_i32 = arith.constant 0 : i32
    %c0_i32_0 = arith.constant 0 : i32
    return %arg0, %c0_i32 : i32, i32
  }
}

</mosaic_0001>

<bundles_post_ra>
// kernel: tile.18
= control target key start
LH: loop header
LB: loop body
LE: loop exit
PB: predicated region body
PF: predicated region fallthrough
CT: control target
= control target key end

     0   :  { %s22_s0 = inlined_call_operand.vmem [shape: f32[32], index: 0, kind: input, shape index: {}]   ;;  %s23_s1 = inlined_call_operand.vmem [shape: f32[4,32], index: 1, kind: output, shape index: {}]  }
   0x1   :  { %v4_v0 = vld [vmem:[%s22_s0] ss:$0 sm:$0xff] }
   0x2   :  { %5 = vst [vmem:[%s23_s1] sm:$0xf] %v4_v0 }

// kernel: _lambda_.1
= control target key start
LH: loop header
LB: loop body
LE: loop exit
PB: predicated region body
PF: predicated region fallthrough
CT: control target
= control target key end

     0   :  { %s1028_s9 = smov 0   ;;  %s1165_s0 = inlined_call_operand.vmem [shape: bf16[256,384], index: 0, kind: input, shape index: {}]   ;;  %s1166_s1 = inlined_call_operand.vmem [shape: bf16[384,128], index: 1, kind: input, shape index: {}]   ;;  %s1167_s2 = inlined_call_operand.vmem [shape: f32[256,128], index: 2, kind: output, shape index: {}]  }
   0x1 LB: > { %s769_s10 = sadd.s32 4294967295, %s1011_s9   ;;  %p773_p0 = scmp.ge.s32.totalorder %s1011_s9, 1  ;;  %s1011_s9 = sphi %s1028_s9, %s12_s9  }
   0x2   : > { %p114_p1 = scmp.lt.s32.totalorder %s1011_s9, 3 }
   0x4   : > { %p115_p2 = pnand %p773_p0, %p114_p1 }
   0x5   : > { %s774_s27 = sshll.u32 (!%p115_p2), %s769_s10, 4 }
   0x6   : > { %118 = sbr.rel (%p115_p2) target bundleno = 304 (0x130), region = 28  ;;  %p138_p3 = scmp.lt.s32.totalorder (!%p115_p2), %s774_s27, 31 }
   0xb   : > { %v949_v0 = vld [vmem:[%s1166_s1 + $0x78] sm:$0xff]   ;;  %v952_v3 = vld [vmem:[%s1166_s1 + $0x70] sm:$0xff]   ;;  %v955_v6 = vld [vmem:[%s1166_s1 + $0x68] sm:$0xff]   ;;  %s1169_s27 = smov (!%p138_p3, %s774_s27), 31 }
   0xc   : > { %v950_v1 = vld [vmem:[%s1166_s1 + $0x38] sm:$0xff]   ;;  %828 = vmatprep.subr.bf16.mxu0 %v949_v0  ;;  %v953_v4 = vld [vmem:[%s1166_s1 + $0x30] sm:$0xff]   ;;  %v956_v7 = vld [vmem:[%s1166_s1 + $0x28] sm:$0xff]   ;;  %s940_s19 = smul.u32 12, %s1169_s27  ;;  %s777_s11 = sshll.u32 %s1169_s27, 3 }
   0xd   : > { %v951_v2 = vld [vmem:[%s1166_s1 + $0xb8] sm:$0xff]   ;;  %829 = vmatpush3.bf16.msra.mxu0 %v950_v1  ;;  %v954_v5 = vld [vmem:[%s1166_s1 + $0xb0] sm:$0xff]   ;;  %v957_v8 = vld [vmem:[%s1166_s1 + $0xa8] sm:$0xff]   ;;  %s1144_s14 = scalar_lea.vmem %s1167_s2, %s777_s11 }
   0xe   : > { %908 = vmatprep.subr.bf16.mxu1 %v951_v2  ;;  %830 = vmatprep.subr.bf16.mxu0 %v952_v3  ;;  %v958_v9 = vld [vmem:[%s1166_s1 + $0x60] sm:$0xff]   ;;  %v961_v12 = vld [vmem:[%s1166_s1 + $0x58] sm:$0xff]   ;;  %v964_v15 = vld [vmem:[%s1166_s1 + $0x50] sm:$0xff]   ;;  %s1105_s3 = scalar_lea.vmem %s1165_s0, %s940_s19 }
   0xf   : > { %909 = vmatpush3.bf16.msra.mxu1 %v951_v2  ;;  %v959_v10 = vld [vmem:[%s1166_s1 + $0x20] sm:$0xff]   ;;  %v963_v13 = vld [vmem:[%s1166_s1 + $0x98] sm:$0xff]   ;;  %v966_v16 = vld [vmem:[%s1166_s1 + $0x90] sm:$0xff]  }
  0x10   : > { %910 = vmatprep.subr.bf16.mxu1 %v954_v5  ;;  %v960_v11 = vld [vmem:[%s1166_s1 + $0xa0] sm:$0xff]   ;;  %v962_v14 = vld [vmem:[%s1166_s1 + $0x18] sm:$0xff]   ;;  %v965_v17 = vld [vmem:[%s1166_s1 + $0x10] sm:$0xff]  }
  0x11   : > { %831 = vmatpush3.bf16.msra.mxu0 %v953_v4  ;;  %v967_v18 = vld [vmem:[%s1166_s1 + $0x48] sm:$0xff]   ;;  %v970_v21 = vld [vmem:[%s1166_s1 + $0x40] sm:$0xff]   ;;  %v985_v32 = vld [vmem:[%s1105_s3 + $0x50] ss:$12 sps:$4 sm:$0xff]  }
  0x12   : > { %832 = vmatprep.subr.bf16.mxu0 %v955_v6  ;;  %v968_v19 = vld [vmem:[%s1166_s1 + $0x8] sm:$0xff]   ;;  %v972_v22 = vld [vmem:[%s1166_s1 + $0x80] sm:$0xff]   ;;  %v983_v34 = vld [vmem:[%s1105_s3 + $0x30] ss:$12 sps:$4 sm:$0xff]  }
  0x13   : > { %911 = vmatpush3.bf16.msra.mxu1 %v954_v5  ;;  %v969_v20 = vld [vmem:[%s1166_s1 + $0x88] sm:$0xff]   ;;  %v975_v23 = vld [vmem:[%s1105_s3 + $0x4] ss:$12 sps:$4 sm:$0xff]   ;;  %v981_v31 = vld [vmem:[%s1105_s3 + $0x34] ss:$12 sps:$4 sm:$0xff]  }
  0x14   : > { %912 = vmatprep.subr.bf16.mxu1 %v957_v8  ;;  %v976_v24 = vld [vmem:[%s1105_s3 + $0x8] ss:$12 sps:$4 sm:$0xff]   ;;  %v971_v25 = vld [vmem:[%s1166_s1] sm:$0xff]   ;;  %535 = vmatprep.mubr.bf16.mxu0 %v975_v23  ;;  %v986_v35 = vld [vmem:[%s1105_s3 + $0x4c] ss:$12 sps:$4 sm:$0xff]  }
  0x15   : > { %833 = vmatpush3.bf16.msra.mxu0 %v956_v7  ;;  %924 = vmatprep.mubr.bf16.mxu1 %v976_v24  ;;  %v973_v26 = vld [vmem:[%s1105_s3] ss:$12 sps:$4 sm:$0xff]   ;;  %v978_v27 = vld [vmem:[%s1105_s3 + $0x1c] ss:$12 sps:$4 sm:$0xff]   ;;  %v984_v29 = vld [vmem:[%s1105_s3 + $0x38] ss:$12 sps:$4 sm:$0xff]  }
  0x16   : > { %834 = vmatprep.subr.bf16.mxu0 %v958_v9  ;;  %v977_v28 = vld [vmem:[%s1105_s3 + $0x20] ss:$12 sps:$4 sm:$0xff]   ;;  %v980_v30 = vld [vmem:[%s1105_s3 + $0x18] ss:$12 sps:$4 sm:$0xff]   ;;  %v992_v33 = vld [vmem:[%s1105_s3 + $0x68] ss:$12 sps:$4 sm:$0xff]  }
  0x17   : > { %913 = vmatpush3.bf16.msra.mxu1 %v957_v8  ;;  %v993_v36 = vld [vmem:[%s1105_s3 + $0x80] ss:$12 sps:$4 sm:$0xff]   ;;  %v1000_v37 = vld [vmem:[%s1105_s3 + $0x98] ss:$12 sps:$4 sm:$0xff]   ;;  %v988_v38 = vld [vmem:[%s1105_s3 + $0x48] ss:$12 sps:$4 sm:$0xff]  }
  0x18   : > { %914 = vmatprep.subr.bf16.mxu1 %v960_v11  ;;  %v989_v39 = vld [vmem:[%s1105_s3 + $0x64] ss:$12 sps:$4 sm:$0xff]   ;;  %v991_v41 = vld [vmem:[%s1105_s3 + $0x60] ss:$12 sps:$4 sm:$0xff]   ;;  %v994_v42 = vld [vmem:[%s1105_s3 + $0x7c] ss:$12 sps:$4 sm:$0xff]  }
  0x19   : > { %835 = vmatpush3.bf16.msra.mxu0 %v959_v10  ;;  %v1001_v40 = vld [vmem:[%s1105_s3 + $0xb0] ss:$12 sps:$4 sm:$0xff]   ;;  %v996_v43 = vld [vmem:[%s1105_s3 + $0x78] ss:$12 sps:$4 sm:$0xff]   ;;  %v997_v44 = vld [vmem:[%s1105_s3 + $0x94] ss:$12 sps:$4 sm:$0xff]  }
  0x1a   : > { %836 = vmatprep.subr.bf16.mxu0 %v961_v12  ;;  %v999_v45 = vld [vmem:[%s1105_s3 + $0x90] ss:$12 sps:$4 sm:$0xff]   ;;  %v1002_v46 = vld [vmem:[%s1105_s3 + $0xac] ss:$12 sps:$4 sm:$0xff]   ;;  %v1004_v47 = vld [vmem:[%s1105_s3 + $0xa8] ss:$12 sps:$4 sm:$0xff]  }
  0x1b   : > { %915 = vmatpush3.bf16.msra.mxu1 %v960_v11 }
  0x1c   : > { %916 = vmatprep.subr.bf16.mxu1 %v963_v13 }
  0x1d   : > { %837 = vmatpush3.bf16.msra.mxu0 %v962_v14 }
  0x1e   : > { %838 = vmatprep.subr.bf16.mxu0 %v964_v15 }
  0x1f   : > { %917 = vmatpush3.bf16.msra.mxu1 %v963_v13 }
  0x20   : > { %918 = vmatprep.subr.bf16.mxu1 %v966_v16 }
  0x21   : > { %839 = vmatpush3.bf16.msra.mxu0 %v965_v17 }
  0x22   : > { %840 = vmatprep.subr.bf16.mxu0 %v967_v18 }
  0x23   : > { %919 = vmatpush3.bf16.msra.mxu1 %v966_v16 }
  0x24   : > { %920 = vmatprep.subr.bf16.mxu1 %v969_v20 }
  0x25   : > { %841 = vmatpush3.bf16.msra.mxu0 %v968_v19 }
  0x26   : > { %842 = vmatprep.subr.bf16.mxu0 %v970_v21 }
  0x27   : > { %921 = vmatpush3.bf16.msra.mxu1 %v969_v20 }
  0x28   : > { %922 = vmatprep.subr.bf16.mxu1 %v972_v22 }
  0x29   : > { %843 = vmatpush3.bf16.msra.mxu0 %v971_v25 }
  0x2b   : > { %923 = vmatpush3.bf16.msra.mxu1 %v972_v22 }
  0x2c   : > { %536 = vmatmul.mubr.bf16.vlgmr.msra.gmra.mxu0 %v973_v26 }
  0x2d   : > { %543 = vmatprep.mubr.bf16.mxu0 %v978_v27 }
  0x2e   : > { %925 = vmatmul.mubr.bf16.vlgmr.msra.gmra.mxu1 %v977_v28 }
  0x2f   : > { %928 = vmatprep.mubr.bf16.mxu1 %v984_v29 }
  0x34   : > { %544 = vmatmul.mubr.bf16.gmra.mxu0 %v980_v30 }
  0x35   : > { %551 = vmatprep.mubr.bf16.mxu0 %v981_v31 }
  0x36   : > { %929 = vmatmul.mubr.bf16.gmra.mxu1 %v985_v32 }
  0x37   : > { %932 = vmatprep.mubr.bf16.mxu1 %v992_v33 }
  0x3c   : > { %552 = vmatmul.mubr.bf16.gmra.mxu0 %v983_v34 }
  0x3d   : > { %559 = vmatprep.mubr.bf16.mxu0 %v986_v35 }
  0x3e   : > { %933 = vmatmul.mubr.bf16.gmra.mxu1 %v993_v36 }
  0x3f   : > { %936 = vmatprep.mubr.bf16.mxu1 %v1000_v37 }
  0x44   : > { %560 = vmatmul.mubr.bf16.gmra.mxu0 %v988_v38 }
  0x45   : > { %567 = vmatprep.mubr.bf16.mxu0 %v989_v39 }
  0x46   : > { %937 = vmatmul.mubr.bf16.gmra.mxu1 %v1001_v40 }
  0x4c   : > { %568 = vmatmul.mubr.bf16.gmra.mxu0 %v991_v41 }
  0x4d   : > { %575 = vmatprep.mubr.bf16.mxu0 %v994_v42 }
  0x54   : > { %576 = vmatmul.mubr.bf16.gmra.mxu0 %v996_v43 }
  0x55   : > { %583 = vmatprep.mubr.bf16.mxu0 %v997_v44 }
  0x5c   : > { %584 = vmatmul.mubr.bf16.gmra.mxu0 %v999_v45 }
  0x5d   : > { %591 = vmatprep.mubr.bf16.mxu0 %v1002_v46 }
  0x64   : > { %592 = vmatmul.mubr.bf16.gmra.mxu0 %v1004_v47 }
  0xec   : > { %v844_v48 = vpop.f32.mrf.mxu0 }
  0xee   : > { %v845_v49 = vpop.f32.mrf.mxu0  ;;  %v926_v50 = vpop.f32.mrf.mxu1 }
  0xef   : > { %v846_v51 = vadd.f32 %v845_v49, %v844_v48 }
  0xf0   : > { %v847_v52 = vpop.f32.mrf.mxu0  ;;  %v634_v53 = vpop.f32.mrf.mxu1 }
  0xf1   : > { %v635_v54 = vadd.f32 %v846_v51, %v634_v53 }
  0xf2   : > { %v848_v55 = vpop.f32.mrf.mxu0  ;;  %v927_v56 = vpop.f32.mrf.mxu1 }
  0xf3   : > { %697 = vst [vmem:[%s1144_s14] sm:$0xff] %v635_v54  ;;  %v849_v57 = vadd.f32 %v848_v55, %v847_v52 }
  0xf4   : > { %v850_v58 = vpop.f32.mrf.mxu0  ;;  %v637_v59 = vpop.f32.mrf.mxu1 }
  0xf5   : > { %v638_v60 = vadd.f32 %v849_v57, %v637_v59 }
  0xf6   : > { %v851_v61 = vpop.f32.mrf.mxu0  ;;  %v930_v62 = vpop.f32.mrf.mxu1 }
  0xf7   : > { %698 = vst [vmem:[%s1144_s14 + $0x8] sm:$0xff] %v638_v60  ;;  %v852_v63 = vadd.f32 %v851_v61, %v850_v58 }
  0xf8   : > { %v853_v0 = vpop.f32.mrf.mxu0  ;;  %v650_v3 = vpop.f32.mrf.mxu1 }
  0xf9   : > { %v643_v1 = vadd.f32 %v926_v50, %v852_v63 }
  0xfa   : > { %v854_v2 = vpop.f32.mrf.mxu0  ;;  %v931_v8 = vpop.f32.mrf.mxu1 }
  0xfb   : > { %699 = vst [vmem:[%s1144_s14 + $0x10] sm:$0xff] %v643_v1  ;;  %v855_v4 = vadd.f32 %v854_v2, %v853_v0 }
  0xfc   : > { %v856_v5 = vpop.f32.mrf.mxu0  ;;  %v653_v13 = vpop.f32.mrf.mxu1 }
  0xfd   : > { %v646_v6 = vadd.f32 %v927_v56, %v855_v4 }
  0xfe   : > { %v857_v7 = vpop.f32.mrf.mxu0  ;;  %v934_v18 = vpop.f32.mrf.mxu1 }
  0xff   : > { %700 = vst [vmem:[%s1144_s14 + $0x18] sm:$0xff] %v646_v6  ;;  %v858_v9 = vadd.f32 %v857_v7, %v856_v5 }
 0x100   : > { %v859_v10 = vpop.f32.mrf.mxu0  ;;  %v666_v23 = vpop.f32.mrf.mxu1 }
 0x101   : > { %v651_v11 = vadd.f32 %v858_v9, %v650_v3 }
 0x102   : > { %v860_v12 = vpop.f32.mrf.mxu0  ;;  %v935_v28 = vpop.f32.mrf.mxu1 }
 0x103   : > { %701 = vst [vmem:[%s1144_s14 + $0x20] sm:$0xff] %v651_v11  ;;  %v861_v14 = vadd.f32 %v860_v12, %v859_v10 }
 0x104   : > { %v862_v15 = vpop.f32.mrf.mxu0  ;;  %v669_v33 = vpop.f32.mrf.mxu1 }
 0x105   : > { %v654_v16 = vadd.f32 %v861_v14, %v653_v13 }
 0x106   : > { %v863_v17 = vpop.f32.mrf.mxu0  ;;  %v938_v38 = vpop.f32.mrf.mxu1 }
 0x107   : > { %702 = vst [vmem:[%s1144_s14 + $0x28] sm:$0xff] %v654_v16  ;;  %v864_v19 = vadd.f32 %v863_v17, %v862_v15 }
 0x108   : > { %v865_v20 = vpop.f32.mrf.mxu0  ;;  %v682_v43 = vpop.f32.mrf.mxu1 }
 0x109   : > { %v659_v21 = vadd.f32 %v930_v62, %v864_v19 }
 0x10a   : > { %v866_v22 = vpop.f32.mrf.mxu0  ;;  %v939_v48 = vpop.f32.mrf.mxu1 }
 0x10b   : > { %703 = vst [vmem:[%s1144_s14 + $0x30] sm:$0xff] %v659_v21  ;;  %v867_v24 = vadd.f32 %v866_v22, %v865_v20 }
 0x10c   : > { %v868_v25 = vpop.f32.mrf.mxu0  ;;  %v685_v53 = vpop.f32.mrf.mxu1 }
 0x10d   : > { %v662_v26 = vadd.f32 %v931_v8, %v867_v24 }
 0x10e   : > { %v869_v27 = vpop.f32.mrf.mxu0 }
 0x10f   : > { %704 = vst [vmem:[%s1144_s14 + $0x38] sm:$0xff] %v662_v26  ;;  %v870_v29 = vadd.f32 %v869_v27, %v868_v25 }
 0x110   : > { %v871_v30 = vpop.f32.mrf.mxu0 }
 0x111   : > { %v667_v31 = vadd.f32 %v870_v29, %v666_v23 }
 0x112   : > { %v872_v32 = vpop.f32.mrf.mxu0 }
 0x113   : > { %705 = vst [vmem:[%s1144_s14 + $0x40] sm:$0xff] %v667_v31  ;;  %v873_v34 = vadd.f32 %v872_v32, %v871_v30 }
 0x114   : > { %v874_v35 = vpop.f32.mrf.mxu0 }
 0x115   : > { %v670_v36 = vadd.f32 %v873_v34, %v669_v33 }
 0x116   : > { %v875_v37 = vpop.f32.mrf.mxu0 }
 0x117   : > { %706 = vst [vmem:[%s1144_s14 + $0x48] sm:$0xff] %v670_v36  ;;  %v876_v39 = vadd.f32 %v875_v37, %v874_v35 }
 0x118   : > { %v877_v40 = vpop.f32.mrf.mxu0 }
 0x119   : > { %v675_v41 = vadd.f32 %v934_v18, %v876_v39 }
 0x11a   : > { %v878_v42 = vpop.f32.mrf.mxu0 }
 0x11b   : > { %707 = vst [vmem:[%s1144_s14 + $0x50] sm:$0xff] %v675_v41  ;;  %v879_v44 = vadd.f32 %v878_v42, %v877_v40 }
 0x11c   : > { %v880_v45 = vpop.f32.mrf.mxu0 }
 0x11d   : > { %v678_v46 = vadd.f32 %v935_v28, %v879_v44 }
 0x11e   : > { %v881_v47 = vpop.f32.mrf.mxu0 }
 0x11f   : > { %708 = vst [vmem:[%s1144_s14 + $0x58] sm:$0xff] %v678_v46  ;;  %v882_v49 = vadd.f32 %v881_v47, %v880_v45 }
 0x120   : > { %v883_v50 = vpop.f32.mrf.mxu0 }
 0x121   : > { %v683_v51 = vadd.f32 %v882_v49, %v682_v43 }
 0x122   : > { %v884_v52 = vpop.f32.mrf.mxu0 }
 0x123   : > { %709 = vst [vmem:[%s1144_s14 + $0x60] sm:$0xff] %v683_v51  ;;  %v885_v54 = vadd.f32 %v884_v52, %v883_v50 }
 0x124   : > { %v886_v55 = vpop.f32.mrf.mxu0 }
 0x125   : > { %v686_v56 = vadd.f32 %v885_v54, %v685_v53 }
 0x126   : > { %v887_v57 = vpop.f32.mrf.mxu0 }
 0x127   : > { %710 = vst [vmem:[%s1144_s14 + $0x68] sm:$0xff] %v686_v56  ;;  %v888_v58 = vadd.f32 %v887_v57, %v886_v55 }
 0x128   : > { %v889_v59 = vpop.f32.mrf.mxu0 }
 0x129   : > { %v691_v60 = vadd.f32 %v938_v38, %v888_v58 }
 0x12a   : > { %v890_v61 = vpop.f32.mrf.mxu0 }
 0x12b   : > { %711 = vst [vmem:[%s1144_s14 + $0x70] sm:$0xff] %v691_v60  ;;  %v891_v62 = vadd.f32 %v890_v61, %v889_v59 }
 0x12d   : > { %v694_v63 = vadd.f32 %v939_v48, %v891_v62 }
 0x12f   : > { %712 = vst [vmem:[%s1144_s14 + $0x78] sm:$0xff] %v694_v63 }
 0x130 PF: > { %s12_s9 = sadd.s32 1, %s1011_s9  }
 0x131   : > { %p9_p4 = scmp.ge.s32.totalorder %s12_s9, 4  }
 0x133   :  { %11 = sbr.rel (!%p9_p4) target bundleno = 1 (0x1), region = 58 }

</bundles_post_ra>
